<compile_context>
chip_gen: v5e
topology: v5e:2x2
jax: 0.10.0
libtpu: 0.0.40
codegen_flags: <defaults>
</compile_context>

<pallas_src>
import functools

import jax
import jax.numpy as jnp
from jax.experimental import pallas as pl
from jax.experimental.pallas import tpu as pltpu

LANE = 128  # TPU lane width; narrow feature dims (50, 10) are padded up to this.


def _round_up(x, m):
    return ((x + m - 1) // m) * m


def mlp_kernel(x_ref, w1_ref, b1_ref, w2_ref, b2_ref, o_ref):
    # fc1: bf16 operands on the MXU, f32 accumulation; bias + ReLU in f32 (VPU).
    h = jnp.dot(x_ref[...], w1_ref[...], preferred_element_type=jnp.float32)
    h = jnp.maximum(h + b1_ref[...], 0.0)            # b1 is (1, HP), broadcasts
    # fc2: cast activations to bf16 for the second MXU pass, accumulate in f32.
    out = jnp.dot(h.astype(jnp.bfloat16), w2_ref[...],
                  preferred_element_type=jnp.float32)
    # Lane-dense (tile_b, CP) store; bf16 output halves the padded writeback.
    o_ref[...] = (out + b2_ref[...]).astype(o_ref.dtype)


def pad_params(w1, b1, w2, b2):
    """One-time lane padding (50->128, 10->128) + bf16 cast of the weights.

    Padded columns/rows are exactly zero, so they contribute nothing through
    ReLU and fc2. Call this once at init and reuse the padded tensors for
    every forward — this traffic is NOT paid per call anymore.
    """
    input_size, hidden = w1.shape
    num_classes = w2.shape[1]
    hp = _round_up(hidden, LANE)
    cp = _round_up(num_classes, LANE)
    w1p = jnp.zeros((input_size, hp), jnp.bfloat16).at[:, :hidden].set(w1.astype(jnp.bfloat16))
    b1p = jnp.zeros((1, hp), jnp.float32).at[:, :hidden].set(b1.astype(jnp.float32))
    w2p = jnp.zeros((hp, cp), jnp.bfloat16).at[:hidden, :num_classes].set(w2.astype(jnp.bfloat16))
    b2p = jnp.zeros((1, cp), jnp.float32).at[:, :num_classes].set(b2.astype(jnp.float32))
    return w1p, b1p, w2p, b2p


def choose_tile_b(batch, *, max_tile=1024, min_tile=128):
    """Pick a batch tile: as large as 512-1024 rows, but always >= 2 grid steps
    so v7x's two TensorCores both get work (on v5e/v6e the 2-step split is
    harmless; per-step overhead is ~0.35 us)."""
    bp = _round_up(batch, 8)
    if bp <= 2 * min_tile:
        return min_tile
    return max(min_tile, min(max_tile, _round_up(pl.cdiv(bp, 2), 8)))


@functools.partial(jax.jit, static_argnames=("num_classes", "tile_b"))
def nn_forward(x, w1p, b1p, w2p, b2p, *, num_classes, tile_b=512):
    """Pallas forward pass: relu(x @ w1 + b1) @ w2 + b2 (same math as the PyTorch NN).

    x should already be bf16 (it is the dominant HBM stream); the weights must
    be the pre-padded tensors from pad_params().
    """
    batch, input_size = x.shape
    hp = w1p.shape[1]
    cp = w2p.shape[1]

    # Fallback cast only — keep activations bf16 upstream to avoid this pass.
    if x.dtype != jnp.bfloat16:
        x = x.astype(jnp.bfloat16)

    # Pad batch up to a multiple of the batch tile (no-op for the common case).
    bp = _round_up(batch, tile_b)
    if bp != batch:
        x = jnp.zeros((bp, input_size), jnp.bfloat16).at[:batch].set(x)

    compiler_kwargs = dict(dimension_semantics=("parallel",))
    if tile_b >= 1024:
        # Big batch tiles: raise the scoped-VMEM limit explicitly (v5e default
        # is only 16 MiB) so the compiler neither fails nor shrinks the pipeline.
        compiler_kwargs["vmem_limit_bytes"] = 64 * 1024 * 1024

    grid = (bp // tile_b,)
    out_padded = pl.pallas_call(
        mlp_kernel,
        out_shape=jax.ShapeDtypeStruct((bp, cp), jnp.bfloat16),
        grid_spec=pltpu.PrefetchScalarGridSpec(
            num_scalar_prefetch=0,
            grid=grid,
            in_specs=[
                # x: pipelined over the batch grid axis (double-buffered).
                pl.BlockSpec((tile_b, input_size), lambda i: (i, 0)),
                # weights/biases: constant index_map -> DMA'd once, VMEM-resident,
                # single-buffered (second buffer would be pure wasted VMEM).
                pl.BlockSpec((input_size, hp), lambda i: (0, 0),
                             pipeline_mode=pl.Buffered(1)),
                pl.BlockSpec((1, hp), lambda i: (0, 0),
                             pipeline_mode=pl.Buffered(1)),
                pl.BlockSpec((hp, cp), lambda i: (0, 0),
                             pipeline_mode=pl.Buffered(1)),
                pl.BlockSpec((1, cp), lambda i: (0, 0),
                             pipeline_mode=pl.Buffered(1)),
            ],
            out_specs=pl.BlockSpec((tile_b, cp), lambda i: (i, 0)),
        ),
        compiler_params=pltpu.CompilerParams(**compiler_kwargs),
    )(x, w1p, b1p, w2p, b2p)

    # Logical slice back to (batch, num_classes) — layout plumbing, not compute.
    # TODO(synk): if the consumer is softmax/cross-entropy/argmax, fuse that
    # epilogue into the kernel (EUP/XLU slots are idle) and skip this padded
    # writeback entirely.
    return out_padded[:batch, :num_classes]


def init_params(key, input_size, hidden, num_classes):
    """Deterministic init mimicking PyTorch nn.Linear default U(-1/sqrt(fan_in), 1/sqrt(fan_in))."""
    k1, k2, k3, k4 = jax.random.split(key, 4)
    bound1 = 1.0 / jnp.sqrt(input_size)
    bound2 = 1.0 / jnp.sqrt(hidden)
    w1 = jax.random.uniform(k1, (input_size, hidden), jnp.float32, -bound1, bound1)
    b1 = jax.random.uniform(k2, (hidden,), jnp.float32, -bound1, bound1)
    w2 = jax.random.uniform(k3, (hidden, num_classes), jnp.float32, -bound2, bound2)
    b2 = jax.random.uniform(k4, (num_classes,), jnp.float32, -bound2, bound2)
    return w1, b1, w2, b2


if __name__ == "__main__":
    # MNIST-style MLP shapes. Batch is 256 -> choose_tile_b gives 128, i.e. a
    # 2-step grid, exercising the pipelined / megacore path while running
    # instantly.
    batch, input_size, hidden, num_classes = 256, 784, 50, 10

    key = jax.random.PRNGKey(0)
    kx, kp = jax.random.split(key)
    # Activations live in bf16 upstream (dominant HBM stream; no per-call cast).
    x = jax.random.normal(kx, (batch, input_size), jnp.float32).astype(jnp.bfloat16)
    w1, b1, w2, b2 = init_params(kp, input_size, hidden, num_classes)

    # One-time pad/cast of the weights; reused by every forward call.
    w1p, b1p, w2p, b2p = pad_params(w1, b1, w2, b2)

    tile_b = choose_tile_b(batch)
    out = nn_forward(x, w1p, b1p, w2p, b2p, num_classes=num_classes, tile_b=tile_b)
    out = jax.block_until_ready(out)

    # Reference check in plain JAX f32 (same math as the PyTorch forward),
    # using the same bf16 x the kernel saw. Tolerance covers the bf16 weight
    # casts (f32 MXU accumulation) and the bf16 logits output.
    xf = x.astype(jnp.float32)
    ref = jnp.maximum(xf @ w1 + b1, 0.0) @ w2 + b2
    assert out.shape == (batch, num_classes)
    err = jnp.max(jnp.abs(out.astype(jnp.float32) - ref))
    assert jnp.allclose(out.astype(jnp.float32), ref, atol=5e-2, rtol=5e-2), float(err)

    print("KERNEL_OK")
</pallas_src>

<mosaic_0001>
module attributes {stable_mosaic.version = 11 : i64} {
  func.func @mlp_kernel(%arg0: i32, %arg1: memref<128x784xbf16, #tpu.memory_space<vmem>>, %arg2: memref<784x128xbf16, #tpu.memory_space<vmem>>, %arg3: memref<1x128xf32, #tpu.memory_space<vmem>>, %arg4: memref<128x128xbf16, #tpu.memory_space<vmem>>, %arg5: memref<1x128xf32, #tpu.memory_space<vmem>>, %arg6: memref<128x128xbf16, #tpu.memory_space<vmem>>) attributes {dimension_semantics = [#tpu.dimension_semantics<parallel>], iteration_bounds = array<i64: 2>, scalar_prefetch = 0 : i64, scratch_operands = 0 : i64, tpu.core_type = #tpu.core_type<tc>, window_params = [{transform_indices = @transform_0, window_bounds = array<i64: 128, 784>}, {pipeline_mode = #tpu.pipeline_mode<synchronous>, transform_indices = @transform_1, window_bounds = array<i64: 784, 128>}, {pipeline_mode = #tpu.pipeline_mode<synchronous>, transform_indices = @transform_2, window_bounds = array<i64: 1, 128>}, {pipeline_mode = #tpu.pipeline_mode<synchronous>, transform_indices = @transform_3, window_bounds = array<i64: 128, 128>}, {pipeline_mode = #tpu.pipeline_mode<synchronous>, transform_indices = @transform_4, window_bounds = array<i64: 1, 128>}, {transform_indices = @transform_5, window_bounds = array<i64: 128, 128>}]} {
    %c0 = arith.constant 0 : index
    %c0_0 = arith.constant 0 : index
    %0 = vector.load %arg1[%c0, %c0_0] : memref<128x784xbf16, #tpu.memory_space<vmem>>, vector<128x784xbf16>
    %c0_1 = arith.constant 0 : index
    %c0_2 = arith.constant 0 : index
    %1 = vector.load %arg2[%c0_1, %c0_2] : memref<784x128xbf16, #tpu.memory_space<vmem>>, vector<784x128xbf16>
    %cst = arith.constant dense<0.000000e+00> : vector<128x128xf32>
    %2 = tpu.matmul %0, %1, %cst {dimension_numbers = #tpu.dot_dimension_numbers<[1], [0], [0], [1], [0, 0, 1, 1], [], []>} : vector<128x784xbf16>, vector<784x128xbf16>, vector<128x128xf32> -> vector<128x128xf32>
    %c0_3 = arith.constant 0 : index
    %c0_4 = arith.constant 0 : index
    %3 = vector.load %arg3[%c0_3, %c0_4] : memref<1x128xf32, #tpu.memory_space<vmem>>, vector<1x128xf32>
    %4 = vector.broadcast %3 : vector<1x128xf32> to vector<128x128xf32>
    %5 = arith.addf %2, %4 : vector<128x128xf32>
    %cst_5 = arith.constant 0.000000e+00 : f32
    %6 = vector.broadcast %cst_5 : f32 to vector<128x128xf32>
    %7 = arith.maximumf %5, %6 : vector<128x128xf32>
    %8 = arith.truncf %7 : vector<128x128xf32> to vector<128x128xbf16>
    %c0_6 = arith.constant 0 : index
    %c0_7 = arith.constant 0 : index
    %9 = vector.load %arg4[%c0_6, %c0_7] : memref<128x128xbf16, #tpu.memory_space<vmem>>, vector<128x128xbf16>
    %cst_8 = arith.constant dense<0.000000e+00> : vector<128x128xf32>
    %10 = tpu.matmul %8, %9, %cst_8 {dimension_numbers = #tpu.dot_dimension_numbers<[1], [0], [0], [1], [0, 0, 1, 1], [], []>} : vector<128x128xbf16>, vector<128x128xbf16>, vector<128x128xf32> -> vector<128x128xf32>
    %c0_9 = arith.constant 0 : index
    %c0_10 = arith.constant 0 : index
    %11 = vector.load %arg5[%c0_9, %c0_10] : memref<1x128xf32, #tpu.memory_space<vmem>>, vector<1x128xf32>
    %12 = vector.broadcast %11 : vector<1x128xf32> to vector<128x128xf32>
    %13 = arith.addf %10, %12 : vector<128x128xf32>
    %14 = arith.truncf %13 : vector<128x128xf32> to vector<128x128xbf16>
    %c0_11 = arith.constant 0 : index
    %c0_12 = arith.constant 0 : index
    %15 = vector.load %arg6[%c0_11, %c0_12] : memref<128x128xbf16, #tpu.memory_space<vmem>>, vector<128x128xbf16>
    tpu.vector_store %arg6[%c0_11, %c0_12], %14 {strides = array<i32>} : memref<128x128xbf16, #tpu.memory_space<vmem>>, vector<128x128xbf16>,
    return
  }
  func.func @transform_0(%arg0: i32) -> (i32, i32) {
    %c0_i32 = arith.constant 0 : i32
    %c0_i32_0 = arith.constant 0 : i32
    return %arg0, %c0_i32 : i32, i32
  }
  func.func @transform_1(%arg0: i32) -> (i32, i32) {
    %c0_i32 = arith.constant 0 : i32
    %c0_i32_0 = arith.constant 0 : i32
    %c0_i32_1 = arith.constant 0 : i32
    return %c0_i32, %c0_i32_0 : i32, i32
  }
  func.func @transform_2(%arg0: i32) -> (i32, i32) {
    %c0_i32 = arith.constant 0 : i32
    %c0_i32_0 = arith.constant 0 : i32
    %c0_i32_1 = arith.constant 0 : i32
    return %c0_i32, %c0_i32_0 : i32, i32
  }
  func.func @transform_3(%arg0: i32) -> (i32, i32) {
    %c0_i32 = arith.constant 0 : i32
    %c0_i32_0 = arith.constant 0 : i32
    %c0_i32_1 = arith.constant 0 : i32
    return %c0_i32, %c0_i32_0 : i32, i32
  }
  func.func @transform_4(%arg0: i32) -> (i32, i32) {
    %c0_i32 = arith.constant 0 : i32
    %c0_i32_0 = arith.constant 0 : i32
    %c0_i32_1 = arith.constant 0 : i32
    return %c0_i32, %c0_i32_0 : i32, i32
  }
  func.func @transform_5(%arg0: i32) -> (i32, i32) {
    %c0_i32 = arith.constant 0 : i32
    %c0_i32_0 = arith.constant 0 : i32
    return %arg0, %c0_i32 : i32, i32
  }
}

</mosaic_0001>

<bundles_post_ra>
// kernel: nn_forward.1
= control target key start
LH: loop header
LB: loop body
LE: loop exit
PB: predicated region body
PF: predicated region fallthrough
CT: control target
= control target key end

     0   :  { %s2249_s18 = smov 0   ;;  %s2645_s0 = inlined_call_operand.vmem [shape: bf16[256,784], index: 0, kind: input, shape index: {}]   ;;  %s2646_s1 = inlined_call_operand.vmem [shape: bf16[784,128], index: 1, kind: input, shape index: {}]   ;;  %s2647_s2 = inlined_call_operand.vmem [shape: f32[1,128], index: 2, kind: input, shape index: {}]   ;;  %s2648_s3 = inlined_call_operand.vmem [shape: bf16[128,128], index: 3, kind: input, shape index: {}]   ;;  %s2649_s4 = inlined_call_operand.vmem [shape: f32[1,128], index: 4, kind: input, shape index: {}]   ;;  %s2650_s5 = inlined_call_operand.vmem [shape: bf16[256,128], index: 5, kind: output, shape index: {}]  }
   0x1 LB: > { %s1569_s19 = sadd.s32 4294967295, %s2217_s18   ;;  %p1573_p0 = scmp.ge.s32.totalorder %s2217_s18, 1  ;;  %s2217_s18 = sphi %s2249_s18, %s15_s18  }
   0x2   : > { %p189_p1 = scmp.lt.s32.totalorder %s2217_s18, 3 }
   0x4   : > { %p190_p2 = pnand %p1573_p0, %p189_p1 }
   0x5   : > { %s1574_s21 = sshll.u32 (!%p190_p2), %s1569_s19, 4 }
   0x6   : > { %193 = sbr.rel (%p190_p2) target bundleno = 576 (0x240), region = 40  ;;  %p219_p3 = scmp.lt.s32.totalorder (!%p190_p2), %s1574_s21, 31 }
   0xb   : > { %v2103_v0 = vld [vmem:[%s2646_s1 + $0x38] sm:$0xff]  ;;  %v2102_v4 = vld [vmem:[%s2646_s1 + $0x30] sm:$0xff]  ;;  %v2101_v8 = vld [vmem:[%s2646_s1 + $0x28] sm:$0xff]  ;;  %s2652_s21 = smov (!%p219_p3, %s1574_s21), 31  ;;  %vm972_vm0 = vcmask 130048  }
   0xc   : > { %v2111_v1 = vld [vmem:[%s2646_s1 + $0x78] sm:$0xff]  ;;  %997 = vmatpush.bf16.msra.mxu0 %v2103_v0  ;;  %v2110_v5 = vld [vmem:[%s2646_s1 + $0x70] sm:$0xff]  ;;  %v2109_v9 = vld [vmem:[%s2646_s1 + $0x68] sm:$0xff]  ;;  %s2200_s16 = smul.u32 28, %s2652_s21  ;;  %s1577_s29 = sshll.u32 %s2652_s21, 2 }
   0xd   : > { %v2119_v2 = vld [vmem:[%s2646_s1 + $0xb8] sm:$0xff]  ;;  %1046 = vmatpush.bf16.msra.mxu1 %v2111_v1  ;;  %v2118_v6 = vld [vmem:[%s2646_s1 + $0xb0] sm:$0xff]  ;;  %v2117_v10 = vld [vmem:[%s2646_s1 + $0xa8] sm:$0xff]  ;;  %s2632_s7 = scalar_lea.vmem %s2650_s5, %s1577_s29 }
   0xe   : > { %v2127_v3 = vld [vmem:[%s2646_s1 + $0xf8] sm:$0xff]  ;;  %1095 = vmatpush.bf16.msra.mxu2 %v2119_v2  ;;  %v2126_v7 = vld [vmem:[%s2646_s1 + $0xf0] sm:$0xff]  ;;  %v2125_v11 = vld [vmem:[%s2646_s1 + $0xe8] sm:$0xff]  ;;  %s2341_s19 = scalar_lea.vmem %s2645_s0, %s2200_s16 }
   0xf   : > { %1144 = vmatpush.bf16.msra.mxu3 %v2127_v3  ;;  %v2100_v12 = vld [vmem:[%s2646_s1 + $0x20] sm:$0xff]  ;;  %v2099_v16 = vld [vmem:[%s2646_s1 + $0x18] sm:$0xff]  ;;  %v2098_v20 = vld [vmem:[%s2646_s1 + $0x10] sm:$0xff] }
  0x10   : > { %998 = vmatpush.bf16.msra.mxu0 %v2102_v4  ;;  %v2108_v13 = vld [vmem:[%s2646_s1 + $0x60] sm:$0xff]  ;;  %v2107_v17 = vld [vmem:[%s2646_s1 + $0x58] sm:$0xff]  ;;  %v2106_v21 = vld [vmem:[%s2646_s1 + $0x50] sm:$0xff] }
  0x11   : > { %1047 = vmatpush.bf16.msra.mxu1 %v2110_v5  ;;  %v2116_v14 = vld [vmem:[%s2646_s1 + $0xa0] sm:$0xff]  ;;  %v2115_v18 = vld [vmem:[%s2646_s1 + $0x98] sm:$0xff]  ;;  %v2114_v22 = vld [vmem:[%s2646_s1 + $0x90] sm:$0xff] }
  0x12   : > { %1096 = vmatpush.bf16.msra.mxu2 %v2118_v6  ;;  %v2124_v15 = vld [vmem:[%s2646_s1 + $0xe0] sm:$0xff]  ;;  %v2123_v19 = vld [vmem:[%s2646_s1 + $0xd8] sm:$0xff]  ;;  %v2122_v23 = vld [vmem:[%s2646_s1 + $0xd0] sm:$0xff] }
  0x13   : > { %1145 = vmatpush.bf16.msra.mxu3 %v2126_v7  ;;  %v2097_v24 = vld [vmem:[%s2646_s1 + $0x8] sm:$0xff]  ;;  %v2096_v28 = vld [vmem:[%s2646_s1] sm:$0xff]  ;;  %v2043_v33 = vld [vmem:[%s2341_s19 + $0x18] sm:$0xf0] }
  0x14   : > { %999 = vmatpush.bf16.msra.mxu0 %v2101_v8  ;;  %v2105_v25 = vld [vmem:[%s2646_s1 + $0x48] sm:$0xff]  ;;  %v2104_v29 = vld [vmem:[%s2646_s1 + $0x40] sm:$0xff]  ;;  %v2135_v41 = vld [vmem:[%s2646_s1 + $0x138] sm:$0xff] }
  0x15   : > { %1048 = vmatpush.bf16.msra.mxu1 %v2109_v9  ;;  %v2113_v26 = vld [vmem:[%s2646_s1 + $0x88] sm:$0xff]  ;;  %v2112_v30 = vld [vmem:[%s2646_s1 + $0x80] sm:$0xff]  ;;  %v2143_v46 = vld [vmem:[%s2646_s1 + $0x178] sm:$0xff] }
  0x16   : > { %1097 = vmatpush.bf16.msra.mxu2 %v2117_v10  ;;  %v2121_v27 = vld [vmem:[%s2646_s1 + $0xc8] sm:$0xff]  ;;  %v2120_v31 = vld [vmem:[%s2646_s1 + $0xc0] sm:$0xff]  ;;  %v2134_v47 = vld [vmem:[%s2646_s1 + $0x130] sm:$0xff] }
  0x17   : > { %1146 = vmatpush.bf16.msra.mxu3 %v2125_v11  ;;  %v1580_v32 = vld [vmem:[%s2341_s19] sm:$0xf]  ;;  %v2040_v34 = vld [vmem:[%s2341_s19 + $0x4] sm:$0xf]  ;;  %v1588_v36 = vld [vmem:[%s2341_s19 + $0x8] sm:$0xf] }
  0x18   : > { %1000 = vmatpush.bf16.msra.mxu0 %v2100_v12  ;;  %v1582_v35 = vld [vmem:[%s2341_s19 + $0x1c] sm:$0xf0]  ;;  %v2044_v37 = vld [vmem:[%s2341_s19 + $0x20] sm:$0xf0]  ;;  %v2041_v38 = vld [vmem:[%s2341_s19 + $0xc] sm:$0xf]  ;;  %v1581_v42 = vor.u32 %v2043_v33, %v1580_v32 }
  0x19   : > { %1049 = vmatpush.bf16.msra.mxu1 %v2108_v13  ;;  %v1590_v39 = vld [vmem:[%s2341_s19 + $0x24] sm:$0xf0]  ;;  %v2144_v40 = vld [vmem:[%s2646_s1 + $0x180] sm:$0xff]  ;;  %v1585_v43 = vor.u32 %v2040_v34, %v1582_v35  ;;  %v1589_v44 = vor.u32 %v2044_v37, %v1588_v36  ;;  %v2142_v48 = vld [vmem:[%s2646_s1 + $0x170] sm:$0xff] }
  0x1a   : > { %1098 = vmatpush.bf16.msra.mxu2 %v2116_v14  ;;  %v1593_v45 = vor.u32 %v2041_v38, %v1590_v39  ;;  %v2133_v49 = vld [vmem:[%s2646_s1 + $0x128] sm:$0xff]  ;;  %v1608_v51 = vld [vmem:[%s2341_s19 + $0x38] sm:$0xf]  ;;  %v2050_v52 = vld [vmem:[%s2341_s19 + $0x50] sm:$0xf0] }
  0x1b   : > { %1147 = vmatpush.bf16.msra.mxu3 %v2124_v15  ;;  %v2141_v50 = vld [vmem:[%s2646_s1 + $0x168] sm:$0xff]  ;;  %v2047_v53 = vld [vmem:[%s2341_s19 + $0x3c] sm:$0xf]  ;;  %v1610_v54 = vld [vmem:[%s2341_s19 + $0x54] sm:$0xf0]  ;;  %v1609_v59 = vor.u32 %v2050_v52, %v1608_v51 }
  0x1c   : > { %1001 = vmatpush.bf16.msra.mxu0 %v2099_v16  ;;  %v1616_v55 = vld [vmem:[%s2341_s19 + $0x40] sm:$0xf]  ;;  %v2051_v56 = vld [vmem:[%s2341_s19 + $0x58] sm:$0xf0]  ;;  %v2048_v57 = vld [vmem:[%s2341_s19 + $0x44] sm:$0xf]  ;;  %v1613_v60 = vor.u32 %v2047_v53, %v1610_v54 }
  0x1d   : > { %1050 = vmatpush.bf16.msra.mxu1 %v2107_v17  ;;  %v1618_v58 = vld [vmem:[%s2341_s19 + $0x5c] sm:$0xf0]  ;;  %v1617_v61 = vor.u32 %v2051_v56, %v1616_v55  ;;  %v1636_v1 = vld [vmem:[%s2341_s19 + $0x70] sm:$0xf]  ;;  %v2057_v2 = vld [vmem:[%s2341_s19 + $0x88] sm:$0xf0] }
  0x1e   : > { %1099 = vmatpush.bf16.msra.mxu2 %v2115_v18  ;;  %v1621_v62 = vor.u32 %v2048_v57, %v1618_v58  ;;  %v2132_v63 = vld [vmem:[%s2646_s1 + $0x120] sm:$0xff]  ;;  %v2054_v3 = vld [vmem:[%s2341_s19 + $0x74] sm:$0xf]  ;;  %v1638_v4 = vld [vmem:[%s2341_s19 + $0x8c] sm:$0xf0]  ;;  %v1637_v9 = vor.u32 %v2057_v2, %v1636_v1 }
  0x1f   : > { %1148 = vmatpush.bf16.msra.mxu3 %v2123_v19  ;;  %v2140_v0 = vld [vmem:[%s2646_s1 + $0x160] sm:$0xff]  ;;  %v1644_v5 = vld [vmem:[%s2341_s19 + $0x78] sm:$0xf]  ;;  %v2058_v6 = vld [vmem:[%s2341_s19 + $0x90] sm:$0xf0]  ;;  %v1641_v10 = vor.u32 %v2054_v3, %v1638_v4 }
  0x20   : > { %1002 = vmatpush.bf16.msra.mxu0 %v2098_v20  ;;  %v2055_v7 = vld [vmem:[%s2341_s19 + $0x7c] sm:$0xf]  ;;  %v1646_v8 = vld [vmem:[%s2341_s19 + $0x94] sm:$0xf0]  ;;  %v1645_v11 = vor.u32 %v2058_v6, %v1644_v5  ;;  %v1664_v15 = vld [vmem:[%s2341_s19 + $0xa8] sm:$0xf] }
  0x21   : > { %1051 = vmatpush.bf16.msra.mxu1 %v2106_v21  ;;  %v1649_v12 = vor.u32 %v2055_v7, %v1646_v8  ;;  %v2131_v13 = vld [vmem:[%s2646_s1 + $0x118] sm:$0xff]  ;;  %v2064_v16 = vld [vmem:[%s2341_s19 + $0xc0] sm:$0xf0]  ;;  %v2061_v17 = vld [vmem:[%s2341_s19 + $0xac] sm:$0xf] }
  0x22   : > { %1100 = vmatpush.bf16.msra.mxu2 %v2114_v22  ;;  %v2139_v14 = vld [vmem:[%s2646_s1 + $0x158] sm:$0xff]  ;;  %v1666_v18 = vld [vmem:[%s2341_s19 + $0xc4] sm:$0xf0]  ;;  %v1672_v19 = vld [vmem:[%s2341_s19 + $0xb0] sm:$0xf] }
  0x23   : > { %1149 = vmatpush.bf16.msra.mxu3 %v2122_v23  ;;  %v2065_v20 = vld [vmem:[%s2341_s19 + $0xc8] sm:$0xf0]  ;;  %v2062_v21 = vld [vmem:[%s2341_s19 + $0xb4] sm:$0xf]  ;;  %v1674_v22 = vld [vmem:[%s2341_s19 + $0xcc] sm:$0xf0]  ;;  %v1665_v23 = vor.u32 %v2064_v16, %v1664_v15 }
  0x24   : > { %1003 = vmatpush.bf16.msra.mxu0 %v2097_v24  ;;  %v1669_v24 = vor.u32 %v2061_v17, %v1666_v18  ;;  %v1694_v32 = vld [vmem:[%s2341_s19 + $0xfc] sm:$0xf0]  ;;  %v1700_v33 = vld [vmem:[%s2341_s19 + $0xe8] sm:$0xf]  ;;  %v2072_v34 = vld [vmem:[%s2341_s19 + $0x100] sm:$0xf0] }
  0x25   : > { %1052 = vmatpush.bf16.msra.mxu1 %v2105_v25  ;;  %v1673_v25 = vor.u32 %v2065_v20, %v1672_v19  ;;  %v2069_v35 = vld [vmem:[%s2341_s19 + $0xec] sm:$0xf]  ;;  %v1702_v36 = vld [vmem:[%s2341_s19 + $0x104] sm:$0xf0]  ;;  %v1701_v39 = vor.u32 %v2072_v34, %v1700_v33  ;;  %v2128_v55 = vld [vmem:[%s2646_s1 + $0x100] sm:$0xff] }
  0x26   : > { %1101 = vmatpush.bf16.msra.mxu2 %v2113_v26  ;;  %v1677_v26 = vor.u32 %v2062_v21, %v1674_v22  ;;  %v2136_v56 = vld [vmem:[%s2646_s1 + $0x140] sm:$0xff]  ;;  %v1748_v57 = vld [vmem:[%s2341_s19 + $0x150] sm:$0xf]  ;;  %v2085_v58 = vld [vmem:[%s2341_s19 + $0x168] sm:$0xf0] }
  0x27   : > { %1150 = vmatpush.bf16.msra.mxu3 %v2121_v27  ;;  %v2130_v27 = vld [vmem:[%s2646_s1 + $0x110] sm:$0xff]  ;;  %v1749_v1 = vor.u32 %v2085_v58, %v1748_v57  ;;  %v1776_v5 = vld [vmem:[%s2341_s19 + $0x188] sm:$0xf]  ;;  %v2092_v6 = vld [vmem:[%s2341_s19 + $0x1a0] sm:$0xf0] }
  0x28   : > { %1004 = vmatpush.bf16.msra.mxu0 %v2096_v28  ;;  %v2138_v28 = vld [vmem:[%s2646_s1 + $0x150] sm:$0xff]  ;;  %v2089_v7 = vld [vmem:[%s2341_s19 + $0x18c] sm:$0xf]  ;;  %v1778_v8 = vld [vmem:[%s2341_s19 + $0x1a4] sm:$0xf0] }
  0x29   : > { %1053 = vmatpush.bf16.msra.mxu1 %v2104_v29  ;;  %v1692_v29 = vld [vmem:[%s2341_s19 + $0xe0] sm:$0xf]  ;;  %v2152_v17 = vld [vmem:[%s2648_s3 + $0x38] sm:$0xff]  ;;  %v1596_v18 = vld [vmem:[%s2341_s19 + $0x10] sm:$0xf] }
  0x2a   : > { %1102 = vmatpush.bf16.msra.mxu2 %v2112_v30  ;;  %v2071_v30 = vld [vmem:[%s2341_s19 + $0xf8] sm:$0xf0]  ;;  %v2045_v19 = vld [vmem:[%s2341_s19 + $0x28] sm:$0xf0]  ;;  %v2042_v20 = vld [vmem:[%s2341_s19 + $0x14] sm:$0xf] }
  0x2b   : > { %1151 = vmatpush.bf16.msra.mxu3 %v2120_v31  ;;  %1005 = vmatmul.bf16.vlgmr.msra.gmra.mxu0 %v1581_v42  ;;  %v2068_v31 = vld [vmem:[%s2341_s19 + $0xe4] sm:$0xf]  ;;  %v1693_v37 = vor.u32 %v2071_v30, %v1692_v29  ;;  %v2137_v42 = vld [vmem:[%s2646_s1 + $0x148] sm:$0xff]  ;;  %v1598_v21 = vld [vmem:[%s2341_s19 + $0x2c] sm:$0xf0] }
  0x2c   : > { %1193 = vmatpush.bf16.msrb.mxu0 %v2135_v41  ;;  %1054 = vmatmul.bf16.vlgmr.msra.gmra.mxu1 %v1585_v43  ;;  %v1697_v38 = vor.u32 %v2068_v31, %v1694_v32  ;;  %v2129_v41 = vld [vmem:[%s2646_s1 + $0x108] sm:$0xff]  ;;  %v1720_v43 = vld [vmem:[%s2341_s19 + $0x118] sm:$0xf]  ;;  %v2486_v22 = vld [vmem:[%s2647_s2] ss:$0 sm:$0xff] }
  0x2d   : > { %1103 = vmatmul.bf16.vlgmr.msra.gmra.mxu2 %v1589_v44  ;;  %1242 = vmatpush.bf16.msrb.mxu1 %v2143_v46  ;;  %v2078_v44 = vld [vmem:[%s2341_s19 + $0x130] sm:$0xf0]  ;;  %v1722_v46 = vld [vmem:[%s2341_s19 + $0x134] sm:$0xf0] }
  0x2e   : > { %1298 = vmatpush.bf16.msrb.mxu2 %v2144_v40  ;;  %1152 = vmatmul.bf16.vlgmr.msra.gmra.mxu3 %v1593_v45  ;;  %v1705_v40 = vor.u32 %v2069_v35, %v1702_v36  ;;  %v2075_v45 = vld [vmem:[%s2341_s19 + $0x11c] sm:$0xf]  ;;  %v1721_v51 = vor.u32 %v2078_v44, %v1720_v43  ;;  %v2151_v32 = vld [vmem:[%s2648_s3 + $0x30] sm:$0xff]  ;;  %v2053_v44 = vld [vmem:[%s2341_s19 + $0x68] sm:$0xf0] }
  0x2f   : > { %v1725_v52 = vor.u32 %v2075_v45, %v1722_v46  ;;  %1432 = vmatpush.bf16.msrb.mxu3 %v2152_v17  ;;  %v1632_v43 = vld [vmem:[%s2341_s19 + $0x50] sm:$0xf] }
  0x30   : > { %1194 = vmatpush.bf16.msrb.mxu0 %v2134_v47  ;;  %v1728_v47 = vld [vmem:[%s2341_s19 + $0x120] sm:$0xf] }
  0x31   : > { %1243 = vmatpush.bf16.msrb.mxu1 %v2142_v48  ;;  %v2079_v48 = vld [vmem:[%s2341_s19 + $0x138] sm:$0xf0] }
  0x32   : > { %v1729_v53 = vor.u32 %v2079_v48, %v1728_v47 }
  0x33   : > { %1433 = vmatpush.bf16.msrb.mxu3 %v2151_v32 }
  0x34   : > { %1195 = vmatpush.bf16.msrb.mxu0 %v2133_v49  ;;  %v2076_v49 = vld [vmem:[%s2341_s19 + $0x124] sm:$0xf] }
  0x35   : > { %1244 = vmatpush.bf16.msrb.mxu1 %v2141_v50  ;;  %v1730_v50 = vld [vmem:[%s2341_s19 + $0x13c] sm:$0xf0] }
  0x36   : > { %v1733_v54 = vor.u32 %v2076_v49, %v1730_v50 }
  0x38   : > { %1196 = vmatpush.bf16.msrb.mxu0 %v2132_v63  ;;  %v2083_v63 = vld [vmem:[%s2341_s19 + $0x15c] sm:$0xf] }
  0x39   : > { %1245 = vmatpush.bf16.msrb.mxu1 %v2140_v0  ;;  %v1758_v0 = vld [vmem:[%s2341_s19 + $0x174] sm:$0xf0] }
  0x3a   : > { %v1761_v4 = vor.u32 %v2083_v63, %v1758_v0  ;;  %v2056_v63 = vld [vmem:[%s2341_s19 + $0x84] sm:$0xf]  ;;  %v1654_v0 = vld [vmem:[%s2341_s19 + $0x9c] sm:$0xf0] }
  0x3b   : > { %1010 = vmatmul.bf16.gmra.mxu0 %v1609_v59  ;;  %v2082_v59 = vld [vmem:[%s2341_s19 + $0x154] sm:$0xf] }
  0x3c   : > { %1059 = vmatmul.bf16.gmra.mxu1 %v1613_v60  ;;  %1197 = vmatpush.bf16.msrb.mxu0 %v2131_v13  ;;  %v1750_v60 = vld [vmem:[%s2341_s19 + $0x16c] sm:$0xf0]  ;;  %v1777_v13 = vor.u32 %v2092_v6, %v1776_v5  ;;  %v1657_v5 = vor.u32 %v2056_v63, %v1654_v0 }
  0x3d   : > { %1108 = vmatmul.bf16.gmra.mxu2 %v1617_v61  ;;  %1246 = vmatpush.bf16.msrb.mxu1 %v2139_v14  ;;  %v1756_v61 = vld [vmem:[%s2341_s19 + $0x158] sm:$0xf]  ;;  %v1753_v2 = vor.u32 %v2082_v59, %v1750_v60  ;;  %v1781_v14 = vor.u32 %v2089_v7, %v1778_v8 }
  0x3e   : > { %1157 = vmatmul.bf16.gmra.mxu3 %v1621_v62  ;;  %v2086_v62 = vld [vmem:[%s2341_s19 + $0x170] sm:$0xf0] }
  0x3f   : > { %v1757_v3 = vor.u32 %v2086_v62, %v1756_v61  ;;  %v1652_v61 = vld [vmem:[%s2341_s19 + $0x80] sm:$0xf]  ;;  %v2059_v62 = vld [vmem:[%s2341_s19 + $0x98] sm:$0xf0] }
  0x40   : > { %1198 = vmatpush.bf16.msrb.mxu0 %v2130_v27 }
  0x41   : > { %1247 = vmatpush.bf16.msrb.mxu1 %v2138_v28 }
  0x44   : > { %1199 = vmatpush.bf16.msrb.mxu0 %v2129_v41  ;;  %v2049_v41 = vld [vmem:[%s2341_s19 + $0x4c] sm:$0xf] }
  0x45   : > { %1248 = vmatpush.bf16.msrb.mxu1 %v2137_v42  ;;  %v1626_v42 = vld [vmem:[%s2341_s19 + $0x64] sm:$0xf0] }
  0x46   : > { %v1629_v47 = vor.u32 %v2049_v41, %v1626_v42 }
  0x48   : > { %1200 = vmatpush.bf16.msrb.mxu0 %v2128_v55 }
  0x49   : > { %1249 = vmatpush.bf16.msrb.mxu1 %v2136_v56 }
  0x4b   : > { %1015 = vmatmul.bf16.gmra.mxu0 %v1637_v9  ;;  %v1784_v9 = vld [vmem:[%s2341_s19 + $0x190] sm:$0xf] }
  0x4c   : > { %1064 = vmatmul.bf16.gmra.mxu1 %v1641_v10  ;;  %v2093_v10 = vld [vmem:[%s2341_s19 + $0x1a8] sm:$0xf0] }
  0x4d   : > { %1113 = vmatmul.bf16.gmra.mxu2 %v1645_v11  ;;  %v2090_v11 = vld [vmem:[%s2341_s19 + $0x194] sm:$0xf]  ;;  %v1785_v15 = vor.u32 %v2093_v10, %v1784_v9 }
  0x4e   : > { %1162 = vmatmul.bf16.gmra.mxu3 %v1649_v12  ;;  %v1786_v12 = vld [vmem:[%s2341_s19 + $0x1ac] sm:$0xf0] }
  0x4f   : > { %v1789_v16 = vor.u32 %v2090_v11, %v1786_v12  ;;  %v2149_v12 = vld [vmem:[%s2648_s3 + $0x20] sm:$0xff] }
  0x5b   : > { %1020 = vmatmul.bf16.gmra.mxu0 %v1665_v23  ;;  %v1604_v23 = vld [vmem:[%s2341_s19 + $0x18] sm:$0xf] }
  0x5c   : > { %1069 = vmatmul.bf16.gmra.mxu1 %v1669_v24  ;;  %v2046_v24 = vld [vmem:[%s2341_s19 + $0x30] sm:$0xf0] }
  0x5d   : > { %1118 = vmatmul.bf16.gmra.mxu2 %v1673_v25  ;;  %v1597_v25 = vor.u32 %v2045_v19, %v1596_v18  ;;  %v1605_v29 = vor.u32 %v2046_v24, %v1604_v23  ;;  %v1680_v19 = vld [vmem:[%s2341_s19 + $0xb8] sm:$0xf]  ;;  %v1688_v24 = vld [vmem:[%s2341_s19 + $0xc0] sm:$0xf] }
  0x5e   : > { %1167 = vmatmul.bf16.gmra.mxu3 %v1677_v26  ;;  %v1601_v26 = vor.u32 %v2042_v20, %v1598_v21  ;;  %v2066_v20 = vld [vmem:[%s2341_s19 + $0xd0] sm:$0xf0]  ;;  %v2063_v21 = vld [vmem:[%s2341_s19 + $0xbc] sm:$0xf]  ;;  %v1682_v23 = vld [vmem:[%s2341_s19 + $0xd4] sm:$0xf0] }
  0x6b   : > { %1025 = vmatmul.bf16.gmra.mxu0 %v1693_v37 }
  0x6c   : > { %1074 = vmatmul.bf16.gmra.mxu1 %v1697_v38 }
  0x6d   : > { %1123 = vmatmul.bf16.gmra.mxu2 %v1701_v39  ;;  %v1624_v39 = vld [vmem:[%s2341_s19 + $0x48] sm:$0xf] }
  0x6e   : > { %1172 = vmatmul.bf16.gmra.mxu3 %v1705_v40  ;;  %v2052_v40 = vld [vmem:[%s2341_s19 + $0x60] sm:$0xf0] }
  0x6f   : > { %v1625_v46 = vor.u32 %v2052_v40, %v1624_v39 }
  0x7b   : > { %1030 = vmatmul.bf16.gmra.mxu0 %v1721_v51  ;;  %v1633_v51 = vor.u32 %v2053_v44, %v1632_v43  ;;  %v1708_v43 = vld [vmem:[%s2341_s19 + $0xf0] sm:$0xf]  ;;  %v2073_v44 = vld [vmem:[%s2341_s19 + $0x108] sm:$0xf0] }
  0x7c   : > { %1079 = vmatmul.bf16.gmra.mxu1 %v1725_v52 }
  0x7d   : > { %1128 = vmatmul.bf16.gmra.mxu2 %v1729_v53 }
  0x7e   : > { %1177 = vmatmul.bf16.gmra.mxu3 %v1733_v54  ;;  %v2150_v54 = vld [vmem:[%s2648_s3 + $0x28] sm:$0xff] }
  0x7f   : > { %1434 = vmatpush.bf16.msrb.mxu3 %v2150_v54 }
  0x83   : > { %1435 = vmatpush.bf16.msrb.mxu3 %v2149_v12 }
  0x8b   : > { %1035 = vmatmul.bf16.gmra.mxu0 %v1749_v1  ;;  %v1660_v1 = vld [vmem:[%s2341_s19 + $0x88] sm:$0xf] }
  0x8c   : > { %1084 = vmatmul.bf16.gmra.mxu1 %v1753_v2  ;;  %v2060_v2 = vld [vmem:[%s2341_s19 + $0xa0] sm:$0xf0] }
  0x8d   : > { %1133 = vmatmul.bf16.gmra.mxu2 %v1757_v3  ;;  %v1661_v9 = vor.u32 %v2060_v2, %v1660_v1 }
  0x8e   : > { %1182 = vmatmul.bf16.gmra.mxu3 %v1761_v4  ;;  %v1653_v4 = vor.u32 %v2059_v62, %v1652_v61 }
  0x9b   : > { %1040 = vmatmul.bf16.gmra.mxu0 %v1777_v13 }
  0x9c   : > { %1089 = vmatmul.bf16.gmra.mxu1 %v1781_v14 }
  0x9d   : > { %1138 = vmatmul.bf16.gmra.mxu2 %v1785_v15 }
  0x9e   : > { %1187 = vmatmul.bf16.gmra.mxu3 %v1789_v16 }
  0xa8   : > { %v1006_v27 = vpop.f32.mrf.mxu0 }
  0xa9   : > { %v1055_v28 = vpop.f32.mrf.mxu1  ;;  %v1007_v30 = vadd.f32 %v2486_v22, %v1006_v27  ;;  %v1681_v27 = vor.u32 %v2066_v20, %v1680_v19  ;;  %v2146_v20 = vld [vmem:[%s2648_s3 + $0x8] sm:$0xff] }
  0xab   : > { %v1056_v31 = vadd.f32 %v1055_v28, %v1007_v30  ;;  %1201 = vmatmul.bf16.vlgmr.msrb.gmra.mxu0 %v1597_v25  ;;  %v2067_v25 = vld [vmem:[%s2341_s19 + $0xd8] sm:$0xf0]  ;;  %v1685_v28 = vor.u32 %v2063_v21, %v1682_v23 }
  0xac   : > { %1250 = vmatmul.bf16.vlgmr.msrb.gmra.mxu1 %v1601_v26  ;;  %v1689_v32 = vor.u32 %v2067_v25, %v1688_v24 }
  0xad   : > { %1998 = vmatmul.msk.bf16.vlgmr.msrb.gmra.mxu2 %vm972_vm0, %v1605_v29 }
  0xb0   : > { %v1104_v33 = vpop.f32.mrf.mxu2  ;;  %v1008_v35 = vpop.f32.mrf.mxu0 }
  0xb1   : > { %v2495_v34 = vadd.f32 %v1104_v33, %v1056_v31  ;;  %v1057_v36 = vpop.f32.mrf.mxu1  ;;  %v1009_v37 = vadd.f32 %v2486_v22, %v1008_v35 }
  0xb3   : > { %v1058_v38 = vadd.f32 %v1057_v36, %v1009_v37  ;;  %v2148_v36 = vld [vmem:[%s2648_s3 + $0x18] sm:$0xff] }
  0xb4   : > { %1436 = vmatpush.bf16.msrb.mxu3 %v2148_v36  ;;  %v1153_v36 = vpop.f32.mrf.mxu3 }
  0xb8   : > { %v1106_v45 = vpop.f32.mrf.mxu2  ;;  %v1011_v49 = vpop.f32.mrf.mxu0 }
  0xb9   : > { %v2504_v48 = vadd.f32 %v1106_v45, %v1058_v38  ;;  %v1060_v50 = vpop.f32.mrf.mxu1  ;;  %v1012_v52 = vadd.f32 %v2486_v22, %v1011_v49  ;;  %v2070_v45 = vld [vmem:[%s2341_s19 + $0xf4] sm:$0xf] }
  0xba   : > { %v2074_v49 = vld [vmem:[%s2341_s19 + $0x110] sm:$0xf0] }
  0xbb   : > { %v1061_v53 = vadd.f32 %v1060_v50, %v1012_v52  ;;  %1206 = vmatmul.bf16.gmra.mxu0 %v1625_v46  ;;  %v1710_v46 = vld [vmem:[%s2341_s19 + $0x10c] sm:$0xf0] }
  0xbc   : > { %1255 = vmatmul.bf16.gmra.mxu1 %v1629_v47  ;;  %v1716_v47 = vld [vmem:[%s2341_s19 + $0xf8] sm:$0xf]  ;;  %v1713_v52 = vor.u32 %v2070_v45, %v1710_v46 }
  0xbd   : > { %1999 = vmatmul.msk.bf16.gmra.mxu2 %vm972_vm0, %v1633_v51  ;;  %v1709_v51 = vor.u32 %v2073_v44, %v1708_v43 }
  0xc0   : > { %v1109_v55 = vpop.f32.mrf.mxu2  ;;  %v1013_v57 = vpop.f32.mrf.mxu0 }
  0xc1   : > { %v2511_v56 = vadd.f32 %v1109_v55, %v1061_v53  ;;  %v1062_v58 = vpop.f32.mrf.mxu1  ;;  %v1014_v59 = vadd.f32 %v2486_v22, %v1013_v57  ;;  %v1717_v57 = vor.u32 %v2074_v49, %v1716_v47  ;;  %v2145_v47 = vld [vmem:[%s2648_s3] sm:$0xff] }
  0xc3   : > { %v1063_v60 = vadd.f32 %v1062_v58, %v1014_v59 }
  0xc8   : > { %v1111_v3 = vpop.f32.mrf.mxu2  ;;  %v1016_v7 = vpop.f32.mrf.mxu0 }
  0xc9   : > { %v2520_v6 = vadd.f32 %v1111_v3, %v1063_v60  ;;  %v1065_v8 = vpop.f32.mrf.mxu1  ;;  %v1017_v10 = vadd.f32 %v2486_v22, %v1016_v7  ;;  %v2147_v60 = vld [vmem:[%s2648_s3 + $0x10] sm:$0xff]  ;;  %v1736_v3 = vld [vmem:[%s2341_s19 + $0x128] sm:$0xf] }
  0xca   : > { %1437 = vmatpush.bf16.msrb.mxu3 %v2147_v60  ;;  %v1738_v7 = vld [vmem:[%s2341_s19 + $0x144] sm:$0xf0]  ;;  %v2091_v60 = vld [vmem:[%s2341_s19 + $0x19c] sm:$0xf] }
  0xcb   : > { %v1066_v11 = vadd.f32 %v1065_v8, %v1017_v10  ;;  %1211 = vmatmul.bf16.gmra.mxu0 %v1653_v4  ;;  %v2080_v4 = vld [vmem:[%s2341_s19 + $0x140] sm:$0xf0]  ;;  %v1744_v8 = vld [vmem:[%s2341_s19 + $0x130] sm:$0xf] }
  0xcc   : > { %1260 = vmatmul.bf16.gmra.mxu1 %v1657_v5  ;;  %v2077_v5 = vld [vmem:[%s2341_s19 + $0x12c] sm:$0xf] }
  0xcd   : > { %2000 = vmatmul.msk.bf16.gmra.mxu2 %vm972_vm0, %v1661_v9  ;;  %v2081_v9 = vld [vmem:[%s2341_s19 + $0x148] sm:$0xf0]  ;;  %v1741_v12 = vor.u32 %v2077_v5, %v1738_v7 }
  0xce   : > { %1438 = vmatpush.bf16.msrb.mxu3 %v2146_v20 }
  0xd0   : > { %v1114_v13 = vpop.f32.mrf.mxu2  ;;  %v1018_v15 = vpop.f32.mrf.mxu0 }
  0xd1   : > { %v2527_v14 = vadd.f32 %v1114_v13, %v1066_v11  ;;  %v1067_v16 = vpop.f32.mrf.mxu1  ;;  %v1019_v17 = vadd.f32 %v2486_v22, %v1018_v15  ;;  %v1737_v11 = vor.u32 %v2080_v4, %v1736_v3 }
  0xd2   : > { %1439 = vmatpush.bf16.msrb.mxu3 %v2145_v47 }
  0xd3   : > { %v1068_v18 = vadd.f32 %v1067_v16, %v1019_v17  ;;  %v1745_v17 = vor.u32 %v2081_v9, %v1744_v8 }
  0xd8   : > { %v1116_v26 = vpop.f32.mrf.mxu2  ;;  %v1021_v30 = vpop.f32.mrf.mxu0 }
  0xd9   : > { %v2536_v29 = vadd.f32 %v1116_v26, %v1068_v18  ;;  %v1070_v31 = vpop.f32.mrf.mxu1  ;;  %v1022_v33 = vadd.f32 %v2486_v22, %v1021_v30  ;;  %v2087_v30 = vld [vmem:[%s2341_s19 + $0x178] sm:$0xf0] }
  0xdb   : > { %v1071_v35 = vadd.f32 %v1070_v31, %v1022_v33  ;;  %1216 = vmatmul.bf16.gmra.mxu0 %v1681_v27  ;;  %v2084_v31 = vld [vmem:[%s2341_s19 + $0x164] sm:$0xf]  ;;  %v1772_v33 = vld [vmem:[%s2341_s19 + $0x168] sm:$0xf] }
  0xdc   : > { %1265 = vmatmul.bf16.gmra.mxu1 %v1685_v28  ;;  %v1764_v28 = vld [vmem:[%s2341_s19 + $0x160] sm:$0xf] }
  0xdd   : > { %2001 = vmatmul.msk.bf16.gmra.mxu2 %vm972_vm0, %v1689_v32  ;;  %v1766_v32 = vld [vmem:[%s2341_s19 + $0x17c] sm:$0xf0] }
  0xe0   : > { %v1119_v37 = vpop.f32.mrf.mxu2  ;;  %v1023_v39 = vpop.f32.mrf.mxu0 }
  0xe1   : > { %v2543_v38 = vadd.f32 %v1119_v37, %v1071_v35  ;;  %v1072_v40 = vpop.f32.mrf.mxu1  ;;  %v1024_v41 = vadd.f32 %v2486_v22, %v1023_v39  ;;  %v2088_v35 = vld [vmem:[%s2341_s19 + $0x180] sm:$0xf0]  ;;  %v1765_v39 = vor.u32 %v2087_v30, %v1764_v28 }
  0xe2   : > { %v1773_v44 = vor.u32 %v2088_v35, %v1772_v33 }
  0xe3   : > { %v1073_v42 = vadd.f32 %v1072_v40, %v1024_v41  ;;  %v1769_v40 = vor.u32 %v2084_v31, %v1766_v32 }
  0xe8   : > { %v1121_v50 = vpop.f32.mrf.mxu2  ;;  %v1026_v54 = vpop.f32.mrf.mxu0 }
  0xe9   : > { %v2552_v53 = vadd.f32 %v1121_v50, %v1073_v42  ;;  %v1075_v55 = vpop.f32.mrf.mxu1  ;;  %v1027_v58 = vadd.f32 %v2486_v22, %v1026_v54  ;;  %v1155_v54 = vpop.f32.mrf.mxu3 }
  0xea   : > { %v1156_v31 = vadd.f32 %v1155_v54, %v2504_v48 }
  0xeb   : > { %v1076_v59 = vadd.f32 %v1075_v55, %v1027_v58  ;;  %1221 = vmatmul.bf16.gmra.mxu0 %v1709_v51  ;;  %v1792_v58 = vld [vmem:[%s2341_s19 + $0x198] sm:$0xf] }
  0xec   : > { %1270 = vmatmul.bf16.gmra.mxu1 %v1713_v52 }
  0xed   : > { %2002 = vmatmul.msk.bf16.gmra.mxu2 %vm972_vm0, %v1717_v57 }
  0xf0   : > { %v1124_v61 = vpop.f32.mrf.mxu2  ;;  %v1028_v63 = vpop.f32.mrf.mxu0 }
  0xf1   : > { %v2559_v62 = vadd.f32 %v1124_v61, %v1076_v59  ;;  %v1077_v0 = vpop.f32.mrf.mxu1  ;;  %v1029_v1 = vadd.f32 %v2486_v22, %v1028_v63  ;;  %v2094_v59 = vld [vmem:[%s2341_s19 + $0x1b0] sm:$0xf0]  ;;  %v1794_v61 = vld [vmem:[%s2341_s19 + $0x1b4] sm:$0xf0]  ;;  %v1800_v63 = vld [vmem:[%s2341_s19 + $0x1a0] sm:$0xf] }
  0xf2   : > { %v1797_v3 = vor.u32 %v2091_v60, %v1794_v61 }
  0xf3   : > { %v1078_v2 = vadd.f32 %v1077_v0, %v1029_v1  ;;  %v2095_v0 = vld [vmem:[%s2341_s19 + $0x1b8] sm:$0xf0] }
  0xf4   : > { %v1801_v8 = vor.u32 %v2095_v0, %v1800_v63 }
  0xf8   : > { %v1126_v10 = vpop.f32.mrf.mxu2  ;;  %v1031_v15 = vpop.f32.mrf.mxu0 }
  0xf9   : > { %v2568_v13 = vadd.f32 %v1126_v10, %v1078_v2  ;;  %v1080_v16 = vpop.f32.mrf.mxu1  ;;  %v1032_v18 = vadd.f32 %v2486_v22, %v1031_v15  ;;  %v1793_v2 = vor.u32 %v2094_v59, %v1792_v58  ;;  %v1158_v10 = vpop.f32.mrf.mxu3 }
  0xfb   : > { %v1081_v19 = vadd.f32 %v1080_v16, %v1032_v18  ;;  %1226 = vmatmul.bf16.gmra.mxu0 %v1737_v11 }
  0xfc   : > { %1275 = vmatmul.bf16.gmra.mxu1 %v1741_v12 }
  0xfd   : > { %2003 = vmatmul.msk.bf16.gmra.mxu2 %vm972_vm0, %v1745_v17 }
 0x100   : > { %v1129_v21 = vpop.f32.mrf.mxu2  ;;  %v1033_v24 = vpop.f32.mrf.mxu0 }
 0x101   : > { %v2575_v23 = vadd.f32 %v1129_v21, %v1081_v19  ;;  %v1082_v25 = vpop.f32.mrf.mxu1  ;;  %v1034_v26 = vadd.f32 %v2486_v22, %v1033_v24  ;;  %v1160_v20 = vpop.f32.mrf.mxu3 }
 0x102   : > { %v1161_v48 = vadd.f32 %v1160_v20, %v2520_v6 }
 0x103   : > { %v1083_v27 = vadd.f32 %v1082_v25, %v1034_v26 }
 0x108   : > { %v1131_v37 = vpop.f32.mrf.mxu2  ;;  %v1036_v42 = vpop.f32.mrf.mxu0 }
 0x109   : > { %v2584_v41 = vadd.f32 %v1131_v37, %v1083_v27  ;;  %v1085_v43 = vpop.f32.mrf.mxu1  ;;  %v1037_v45 = vadd.f32 %v2486_v22, %v1036_v42  ;;  %v1154_v27 = vadd.f32 %v1153_v36, %v2495_v34  ;;  %v1163_v28 = vpop.f32.mrf.mxu3  ;;  %v1159_v34 = vadd.f32 %v1158_v10, %v2511_v56 }
 0x10b   : > { %v1086_v46 = vadd.f32 %v1085_v43, %v1037_v45  ;;  %1231 = vmatmul.bf16.gmra.mxu0 %v1765_v39 }
 0x10c   : > { %1280 = vmatmul.bf16.gmra.mxu1 %v1769_v40 }
 0x10d   : > { %2004 = vmatmul.msk.bf16.gmra.mxu2 %vm972_vm0, %v1773_v44 }
 0x110   : > { %v1134_v49 = vpop.f32.mrf.mxu2  ;;  %v1038_v51 = vpop.f32.mrf.mxu0 }
 0x111   : > { %v2591_v50 = vadd.f32 %v1134_v49, %v1086_v46  ;;  %v1087_v52 = vpop.f32.mrf.mxu1  ;;  %v1039_v55 = vadd.f32 %v2486_v22, %v1038_v51  ;;  %v1165_v46 = vpop.f32.mrf.mxu3 }
 0x113   : > { %v1088_v57 = vadd.f32 %v1087_v52, %v1039_v55 }
 0x118   : > { %v1136_v1 = vpop.f32.mrf.mxu2  ;;  %v1041_v5 = vpop.f32.mrf.mxu0 }
 0x119   : > { %v2600_v4 = vadd.f32 %v1136_v1, %v1088_v57  ;;  %v1090_v7 = vpop.f32.mrf.mxu1  ;;  %v1042_v9 = vadd.f32 %v2486_v22, %v1041_v5  ;;  %v1168_v58 = vpop.f32.mrf.mxu3 }
 0x11b   : > { %v1091_v11 = vadd.f32 %v1090_v7, %v1042_v9  ;;  %1236 = vmatmul.bf16.gmra.mxu0 %v1793_v2  ;;  %v1166_v9 = vadd.f32 %v1165_v46, %v2536_v29 }
 0x11c   : > { %1285 = vmatmul.bf16.gmra.mxu1 %v1797_v3 }
 0x11d   : > { %2005 = vmatmul.msk.bf16.gmra.mxu2 %vm972_vm0, %v1801_v8  ;;  %v1164_v8 = vadd.f32 %v1163_v28, %v2527_v14  ;;  %v1169_v14 = vadd.f32 %v1168_v58, %v2543_v38 }
 0x120   : > { %v1139_v12 = vpop.f32.mrf.mxu2  ;;  %v1043_v16 = vpop.f32.mrf.mxu0 }
 0x121   : > { %v2604_v15 = vadd.f32 %v1139_v12, %v1091_v11  ;;  %v1092_v17 = vpop.f32.mrf.mxu1  ;;  %v1044_v18 = vadd.f32 %v2486_v22, %v1043_v16  ;;  %v1170_v56 = vpop.f32.mrf.mxu3 }
 0x122   : > { %v1171_v29 = vadd.f32 %v1170_v56, %v2552_v53 }
 0x123   : > { %v1093_v19 = vadd.f32 %v1092_v17, %v1044_v18 }
 0x128   : > { %v1141_v21 = vpop.f32.mrf.mxu2  ;;  %v1202_v25 = vpop.f32.mrf.mxu0 }
 0x129   : > { %v2607_v24 = vadd.f32 %v1141_v21, %v1093_v19  ;;  %v1251_v26 = vpop.f32.mrf.mxu1  ;;  %v1203_v32 = vadd.f32 %v1202_v25, %v1154_v27  ;;  %v1173_v20 = vpop.f32.mrf.mxu3 }
 0x12b   : > { %v1252_v39 = vadd.f32 %v1251_v26, %v1203_v32 }
 0x130   : > { %v1300_v30 = vpop.f32.mrf.mxu2  ;;  %v1204_v33 = vpop.f32.mrf.mxu0 }
 0x131   : > { %v1253_v35 = vpop.f32.mrf.mxu1  ;;  %v1205_v37 = vadd.f32 %v1204_v33, %v1156_v31  ;;  %v1301_v40 = vadd.f32 %v1300_v30, %v1252_v39  ;;  %v1175_v39 = vpop.f32.mrf.mxu3 }
 0x133   : > { %v1254_v22 = vadd.f32 %v1253_v35, %v1205_v37  ;;  %v1340_v47 = vmax.f32 %v1301_v40, 0.0 }
 0x138   : > { %v1302_v42 = vpop.f32.mrf.mxu2  ;;  %v1207_v44 = vpop.f32.mrf.mxu0 }
 0x139   : > { %v1303_v43 = vadd.f32 %v1302_v42, %v1254_v22  ;;  %v1256_v45 = vpop.f32.mrf.mxu1  ;;  %v1208_v52 = vadd.f32 %v1207_v44, %v1159_v34  ;;  %v1178_v34 = vpop.f32.mrf.mxu3 }
 0x13b   : > { %v1341_v49 = vmax.f32 %v1303_v43, 0.0  ;;  %v1257_v59 = vadd.f32 %v1256_v45, %v1208_v52 }
 0x13d   : > { %v1356_v51 = vpack.c.bf16 %v1341_v49, %v1340_v47 }
 0x13f   : > { %1440 = vmatmul.bf16.vlgmr.msrb.gmra.mxu3 %v1356_v51 }
 0x140   : > { %v1305_v36 = vpop.f32.mrf.mxu2  ;;  %v1209_v54 = vpop.f32.mrf.mxu0 }
 0x141   : > { %v1258_v55 = vpop.f32.mrf.mxu1  ;;  %v1210_v57 = vadd.f32 %v1209_v54, %v1161_v48  ;;  %v1306_v60 = vadd.f32 %v1305_v36, %v1257_v59  ;;  %v1174_v36 = vadd.f32 %v1173_v20, %v2559_v62  ;;  %v1176_v48 = vadd.f32 %v1175_v39, %v2568_v13  ;;  %v1180_v59 = vpop.f32.mrf.mxu3 }
 0x142   : > { %v1179_v62 = vadd.f32 %v1178_v34, %v2575_v23 }
 0x143   : > { %v1259_v61 = vadd.f32 %v1258_v55, %v1210_v57  ;;  %v1342_v3 = vmax.f32 %v1306_v60, 0.0 }
 0x148   : > { %v1307_v63 = vpop.f32.mrf.mxu2  ;;  %v1212_v1 = vpop.f32.mrf.mxu0 }
 0x149   : > { %v1308_v0 = vadd.f32 %v1307_v63, %v1259_v61  ;;  %v1261_v2 = vpop.f32.mrf.mxu1  ;;  %v1213_v10 = vadd.f32 %v1212_v1, %v1164_v8  ;;  %v1183_v56 = vpop.f32.mrf.mxu3  ;;  %v1181_v8 = vadd.f32 %v1180_v59, %v2584_v41 }
 0x14b   : > { %v1343_v5 = vmax.f32 %v1308_v0, 0.0  ;;  %v1262_v17 = vadd.f32 %v1261_v2, %v1213_v10 }
 0x14d   : > { %v1357_v7 = vpack.c.bf16 %v1343_v5, %v1342_v3 }
 0x14f   : > { %1445 = vmatmul.bf16.gmra.mxu3 %v1357_v7 }
 0x150   : > { %v1310_v6 = vpop.f32.mrf.mxu2  ;;  %v1214_v11 = vpop.f32.mrf.mxu0 }
 0x151   : > { %v1263_v12 = vpop.f32.mrf.mxu1  ;;  %v1215_v16 = vadd.f32 %v1214_v11, %v1166_v9  ;;  %v1311_v18 = vadd.f32 %v1310_v6, %v1262_v17 }
 0x153   : > { %v1264_v19 = vadd.f32 %v1263_v12, %v1215_v16  ;;  %v1344_v30 = vmax.f32 %v1311_v18, 0.0 }
 0x158   : > { %v1312_v21 = vpop.f32.mrf.mxu2  ;;  %v1217_v26 = vpop.f32.mrf.mxu0 }
 0x159   : > { %v1313_v25 = vadd.f32 %v1312_v21, %v1264_v19  ;;  %v1266_v27 = vpop.f32.mrf.mxu1  ;;  %v1218_v33 = vadd.f32 %v1217_v26, %v1169_v14 }
 0x15b   : > { %v1345_v31 = vmax.f32 %v1313_v25, 0.0  ;;  %v1267_v22 = vadd.f32 %v1266_v27, %v1218_v33  ;;  %v1185_v25 = vpop.f32.mrf.mxu3 }
 0x15c   : > { %v1186_v41 = vadd.f32 %v1185_v25, %v2600_v4 }
 0x15d   : > { %v1358_v32 = vpack.c.bf16 %v1345_v31, %v1344_v30  ;;  %v1184_v30 = vadd.f32 %v1183_v56, %v2591_v50 }
 0x15f   : > { %1450 = vmatmul.bf16.gmra.mxu3 %v1358_v32 }
 0x160   : > { %v1315_v28 = vpop.f32.mrf.mxu2  ;;  %v1219_v35 = vpop.f32.mrf.mxu0 }
 0x161   : > { %v1268_v37 = vpop.f32.mrf.mxu1  ;;  %v1220_v40 = vadd.f32 %v1219_v35, %v1171_v29  ;;  %v1316_v42 = vadd.f32 %v1315_v28, %v1267_v22 }
 0x163   : > { %v1269_v43 = vadd.f32 %v1268_v37, %v1220_v40  ;;  %v1346_v49 = vmax.f32 %v1316_v42, 0.0  ;;  %v1188_v33 = vpop.f32.mrf.mxu3 }
 0x168   : > { %v1317_v44 = vpop.f32.mrf.mxu2  ;;  %v1222_v46 = vpop.f32.mrf.mxu0 }
 0x169   : > { %v1318_v45 = vadd.f32 %v1317_v44, %v1269_v43  ;;  %v1271_v47 = vpop.f32.mrf.mxu1  ;;  %v1223_v52 = vadd.f32 %v1222_v46, %v1174_v36 }
 0x16b   : > { %v1347_v51 = vmax.f32 %v1318_v45, 0.0  ;;  %v1272_v58 = vadd.f32 %v1271_v47, %v1223_v52  ;;  %v1190_v50 = vpop.f32.mrf.mxu3  ;;  %v1189_v47 = vadd.f32 %v1188_v33, %v2604_v15  ;;  %v2210_v15 = vld [vmem:[%s2649_s4] ss:$0 sm:$0xff] }
 0x16d   : > { %v1359_v38 = vpack.c.bf16 %v1347_v51, %v1346_v49  ;;  %v1191_v49 = vadd.f32 %v1190_v50, %v2607_v24 }
 0x16f   : > { %1455 = vmatmul.bf16.gmra.mxu3 %v1359_v38 }
 0x170   : > { %v1320_v53 = vpop.f32.mrf.mxu2  ;;  %v1224_v54 = vpop.f32.mrf.mxu0 }
 0x171   : > { %v1273_v55 = vpop.f32.mrf.mxu1  ;;  %v1225_v57 = vadd.f32 %v1224_v54, %v1176_v48  ;;  %v1321_v60 = vadd.f32 %v1320_v53, %v1272_v58 }
 0x173   : > { %v1274_v61 = vadd.f32 %v1273_v55, %v1225_v57  ;;  %v1348_v3 = vmax.f32 %v1321_v60, 0.0 }
 0x178   : > { %v1322_v63 = vpop.f32.mrf.mxu2  ;;  %v1227_v1 = vpop.f32.mrf.mxu0 }
 0x179   : > { %v1323_v0 = vadd.f32 %v1322_v63, %v1274_v61  ;;  %v1276_v2 = vpop.f32.mrf.mxu1  ;;  %v1228_v6 = vadd.f32 %v1227_v1, %v1179_v62 }
 0x17b   : > { %v1349_v5 = vmax.f32 %v1323_v0, 0.0  ;;  %v1277_v12 = vadd.f32 %v1276_v2, %v1228_v6 }
 0x17d   : > { %v1360_v7 = vpack.c.bf16 %v1349_v5, %v1348_v3 }
 0x17f   : > { %1460 = vmatmul.bf16.gmra.mxu3 %v1360_v7 }
 0x180   : > { %v1325_v13 = vpop.f32.mrf.mxu2  ;;  %v1229_v9 = vpop.f32.mrf.mxu0 }
 0x181   : > { %v1278_v10 = vpop.f32.mrf.mxu1  ;;  %v1230_v11 = vadd.f32 %v1229_v9, %v1181_v8  ;;  %v1326_v16 = vadd.f32 %v1325_v13, %v1277_v12 }
 0x183   : > { %v1279_v17 = vadd.f32 %v1278_v10, %v1230_v11  ;;  %v1350_v26 = vmax.f32 %v1326_v16, 0.0 }
 0x188   : > { %v1327_v18 = vpop.f32.mrf.mxu2  ;;  %v1232_v20 = vpop.f32.mrf.mxu0 }
 0x189   : > { %v1328_v19 = vadd.f32 %v1327_v18, %v1279_v17  ;;  %v1281_v21 = vpop.f32.mrf.mxu1  ;;  %v1233_v32 = vadd.f32 %v1232_v20, %v1184_v30 }
 0x18b   : > { %v1351_v27 = vmax.f32 %v1328_v19, 0.0  ;;  %v1282_v35 = vadd.f32 %v1281_v21, %v1233_v32 }
 0x18d   : > { %v1361_v23 = vpack.c.bf16 %v1351_v27, %v1350_v26 }
 0x18f   : > { %1465 = vmatmul.bf16.gmra.mxu3 %v1361_v23 }
 0x190   : > { %v1330_v31 = vpop.f32.mrf.mxu2  ;;  %v1234_v14 = vpop.f32.mrf.mxu0 }
 0x191   : > { %v1283_v28 = vpop.f32.mrf.mxu1  ;;  %v1235_v29 = vadd.f32 %v1234_v14, %v1186_v41  ;;  %v1331_v37 = vadd.f32 %v1330_v31, %v1282_v35 }
 0x193   : > { %v1284_v39 = vadd.f32 %v1283_v28, %v1235_v29  ;;  %v1352_v43 = vmax.f32 %v1331_v37, 0.0 }
 0x198   : > { %v1332_v40 = vpop.f32.mrf.mxu2  ;;  %v1237_v42 = vpop.f32.mrf.mxu0 }
 0x199   : > { %v1333_v22 = vadd.f32 %v1332_v40, %v1284_v39  ;;  %v1286_v45 = vpop.f32.mrf.mxu1  ;;  %v1238_v51 = vadd.f32 %v1237_v42, %v1189_v47 }
 0x19b   : > { %v1353_v44 = vmax.f32 %v1333_v22, 0.0  ;;  %v1287_v36 = vadd.f32 %v1286_v45, %v1238_v51 }
 0x19d   : > { %v1362_v46 = vpack.c.bf16 %v1353_v44, %v1352_v43 }
 0x19f   : > { %1470 = vmatmul.bf16.gmra.mxu3 %v1362_v46 }
 0x1a0   : > { %v1335_v4 = vpop.f32.mrf.mxu2  ;;  %v1239_v34 = vpop.f32.mrf.mxu0 }
 0x1a1   : > { %v1240_v38 = vadd.f32 %v1239_v34, %v1191_v49  ;;  %v1288_v53 = vpop.f32.mrf.mxu1  ;;  %v1336_v48 = vadd.f32 %v1335_v4, %v1287_v36 }
 0x1a3   : > { %v1289_v52 = vadd.f32 %v1288_v53, %v1240_v38  ;;  %v1354_v57 = vmax.f32 %v1336_v48, 0.0 }
 0x1a8   : > { %v1337_v54 = vpop.f32.mrf.mxu2 }
 0x1a9   : > { %v1338_v55 = vadd.f32 %v1337_v54, %v1289_v52 }
 0x1ab   : > { %v1355_v58 = vmax.f32 %v1338_v55, 0.0 }
 0x1ad   : > { %v1363_v59 = vpack.c.bf16 %v1355_v58, %v1354_v57 }
 0x1af   : > { %1475 = vmatmul.bf16.gmra.mxu3 %v1363_v59 }
 0x1c2   : > { %v1441_v60 = vpop.f32.mrf.mxu3 }
 0x1c3   : > { %v1442_v61 = vadd.f32 %v2210_v15, %v1441_v60 }
 0x1ca   : > { %v1443_v24 = vpop.f32.mrf.mxu3 }
 0x1cb   : > { %v1444_v63 = vadd.f32 %v2210_v15, %v1443_v24 }
 0x1cd   : > { %v2156_v0 = vpack.c.bf16 %v1444_v63, %v1442_v61 }
 0x1cf   : > { %2157 = vst [vmem:[%s2632_s7] sm:$0xff] %v2156_v0  }
 0x1d2   : > { %v1446_v1 = vpop.f32.mrf.mxu3 }
 0x1d3   : > { %v1447_v3 = vadd.f32 %v2210_v15, %v1446_v1 }
 0x1da   : > { %v1448_v2 = vpop.f32.mrf.mxu3 }
 0x1db   : > { %v1449_v5 = vadd.f32 %v2210_v15, %v1448_v2 }
 0x1dd   : > { %v2161_v7 = vpack.c.bf16 %v1449_v5, %v1447_v3 }
 0x1df   : > { %2193 = vst [vmem:[%s2632_s7 + $0x8] sm:$0xff] %v2161_v7  }
 0x1e2   : > { %v1451_v62 = vpop.f32.mrf.mxu3 }
 0x1e3   : > { %v1452_v13 = vadd.f32 %v2210_v15, %v1451_v62 }
 0x1ea   : > { %v1453_v56 = vpop.f32.mrf.mxu3 }
 0x1eb   : > { %v1454_v8 = vadd.f32 %v2210_v15, %v1453_v56 }
 0x1ed   : > { %v2166_v6 = vpack.c.bf16 %v1454_v8, %v1452_v13 }
 0x1ef   : > { %2194 = vst [vmem:[%s2632_s7 + $0x10] sm:$0xff] %v2166_v6  }
 0x1f2   : > { %v1456_v9 = vpop.f32.mrf.mxu3 }
 0x1f3   : > { %v1457_v11 = vadd.f32 %v2210_v15, %v1456_v9 }
 0x1fa   : > { %v1458_v10 = vpop.f32.mrf.mxu3 }
 0x1fb   : > { %v1459_v12 = vadd.f32 %v2210_v15, %v1458_v10 }
 0x1fd   : > { %v2171_v16 = vpack.c.bf16 %v1459_v12, %v1457_v11 }
 0x1ff   : > { %2195 = vst [vmem:[%s2632_s7 + $0x18] sm:$0xff] %v2171_v16  }
 0x202   : > { %v1461_v17 = vpop.f32.mrf.mxu3 }
 0x203   : > { %v1462_v19 = vadd.f32 %v2210_v15, %v1461_v17 }
 0x20a   : > { %v1463_v18 = vpop.f32.mrf.mxu3 }
 0x20b   : > { %v1464_v20 = vadd.f32 %v2210_v15, %v1463_v18 }
 0x20d   : > { %v2176_v21 = vpack.c.bf16 %v1464_v20, %v1462_v19 }
 0x20f   : > { %2196 = vst [vmem:[%s2632_s7 + $0x20] sm:$0xff] %v2176_v21  }
 0x212   : > { %v1466_v25 = vpop.f32.mrf.mxu3 }
 0x213   : > { %v1467_v27 = vadd.f32 %v2210_v15, %v1466_v25 }
 0x21a   : > { %v1468_v26 = vpop.f32.mrf.mxu3 }
 0x21b   : > { %v1469_v23 = vadd.f32 %v2210_v15, %v1468_v26 }
 0x21d   : > { %v2181_v30 = vpack.c.bf16 %v1469_v23, %v1467_v27 }
 0x21f   : > { %2197 = vst [vmem:[%s2632_s7 + $0x28] sm:$0xff] %v2181_v30  }
 0x222   : > { %v1471_v31 = vpop.f32.mrf.mxu3 }
 0x223   : > { %v1472_v32 = vadd.f32 %v2210_v15, %v1471_v31 }
 0x22a   : > { %v1473_v41 = vpop.f32.mrf.mxu3 }
 0x22b   : > { %v1474_v14 = vadd.f32 %v2210_v15, %v1473_v41 }
 0x22d   : > { %v2186_v28 = vpack.c.bf16 %v1474_v14, %v1472_v32 }
 0x22f   : > { %2198 = vst [vmem:[%s2632_s7 + $0x30] sm:$0xff] %v2186_v28  }
 0x232   : > { %v1476_v29 = vpop.f32.mrf.mxu3 }
 0x233   : > { %v1477_v35 = vadd.f32 %v2210_v15, %v1476_v29 }
 0x23a   : > { %v1478_v33 = vpop.f32.mrf.mxu3 }
 0x23b   : > { %v1479_v37 = vadd.f32 %v2210_v15, %v1478_v33 }
 0x23d   : > { %v2191_v39 = vpack.c.bf16 %v1479_v37, %v1477_v35 }
 0x23f   : > { %2199 = vst [vmem:[%s2632_s7 + $0x38] sm:$0xff] %v2191_v39  }
 0x240 PF: > { %s15_s18 = sadd.s32 1, %s2217_s18  }
 0x241   : > { %p12_p4 = scmp.ge.s32.totalorder %s15_s18, 4  }
 0x243   :  { %14 = sbr.rel (!%p12_p4) target bundleno = 1 (0x1), region = 70 }

</bundles_post_ra>
